<compile_context>
chip_gen: v5e
topology: v5e:2x2
jax: 0.10.0
libtpu: 0.0.40
codegen_flags: <defaults>
</compile_context>

<pallas_src>
import math
import functools

import jax
import jax.numpy as jnp
from jax.experimental import pallas as pl
from jax.experimental.pallas import tpu as pltpu


_INV_SQRT2 = 1.0 / math.sqrt(2.0)


def _gelu_exact(x):
    # Exact (erf-based) GELU -- matches torch.nn.GELU() default.
    return 0.5 * x * (1.0 + jax.lax.erf(x * _INV_SQRT2))


def mlp_kernel(x_ref, w1_ref, b1_ref, w2_ref, b2_ref, w3_ref, b3_ref, o_ref):
    x = x_ref[...]
    h = jnp.dot(x, w1_ref[...], preferred_element_type=jnp.float32) + b1_ref[...]
    h = _gelu_exact(h)
    h = jnp.dot(h, w2_ref[...], preferred_element_type=jnp.float32) + b2_ref[...]
    h = _gelu_exact(h)
    o_ref[...] = (
        jnp.dot(h, w3_ref[...], preferred_element_type=jnp.float32) + b3_ref[...]
    ).astype(o_ref.dtype)


def _pack_factor(*dims):
    """Smallest P such that P*d is a multiple of 128 for every feature dim d."""
    g = 128
    for d in dims:
        g = math.gcd(g, d)
    return 128 // g


@functools.partial(jax.jit, static_argnames=("bm",))
def mlp_block_pallas(x, w1, b1, w2, b2, w3, b3, *, bm=256):
    """x: (batch, seq, in_dim) -> (batch, seq, out_dim).

    Weights are pre-transposed as (in, out) (== PyTorch x @ W.T + b); biases
    are (1, out).  `bm` = rows per tile in *packed* space (bm*P original rows
    per grid step; 256*8 = 2048 rows, ~128 KiB f32 blocks).
    """
    B, S, D_in = x.shape
    H1, H2, D_out = w1.shape[1], w2.shape[1], w3.shape[1]
    M = B * S

    # Lane-packing factor (P = 8 for the 16/32-wide MLP).
    P = _pack_factor(D_in, H1, H2, D_out)

    # Block-diagonal weights / tiled biases (built once per call, ~0.5 MiB).
    def bd(w):
        return jnp.kron(jnp.eye(P, dtype=w.dtype), w)

    w1p, w2p, w3p = bd(w1), bd(w2), bd(w3)
    b1p = jnp.tile(b1, (1, P))
    b2p = jnp.tile(b2, (1, P))
    b3p = jnp.tile(b3, (1, P))

    # Packed-row geometry: pad packed rows to a sublane multiple; pick the tile
    # so large inputs get big blocks and, when possible, >=2 grid steps (v7x
    # has 2 TensorCores).  Tail rows are zero-padded and sliced off afterwards.
    Mp = pl.cdiv(M, P)
    Mp8 = pl.cdiv(Mp, 8) * 8
    if Mp8 <= 8:
        bm_eff = Mp8
    else:
        bm_eff = min(bm, max(8, (Mp8 // 2) // 8 * 8))
    grid_m = pl.cdiv(Mp8, bm_eff)
    Mp_pad = grid_m * bm_eff
    M_pad = Mp_pad * P

    x2 = x.reshape(M, D_in)
    if M_pad != M:
        x2 = jnp.pad(x2, ((0, M_pad - M), (0, 0)))
    xp = x2.reshape(Mp_pad, P * D_in)  # free row-major repack (no transpose)

    def full(a):
        # Whole array, constant block index -> stays VMEM-resident across grid.
        return pl.BlockSpec(a.shape, lambda i: (0, 0))

    out = pl.pallas_call(
        mlp_kernel,
        out_shape=jax.ShapeDtypeStruct((Mp_pad, P * D_out), x.dtype),
        grid_spec=pl.GridSpec(
            grid=(grid_m,),
            in_specs=[
                pl.BlockSpec((bm_eff, P * D_in), lambda i: (i, 0)),
                full(w1p), full(b1p),
                full(w2p), full(b2p),
                full(w3p), full(b3p),
            ],
            out_specs=pl.BlockSpec((bm_eff, P * D_out), lambda i: (i, 0)),
        ),
        compiler_params=pltpu.CompilerParams(
            dimension_semantics=("parallel",),
        ),
    )(xp, w1p, b1p, w2p, b2p, w3p, b3p)

    y = out.reshape(M_pad, D_out)[:M]
    return y.reshape(B, S, D_out)


def init_params(key, in_dim, hidden1, hidden2, out_dim):
    """Deterministic Linear-style init; weights stored as (in, out)."""
    ks = jax.random.split(key, 6)

    def linear(kw, kb, fan_in, fan_out):
        bound = 1.0 / math.sqrt(fan_in)
        w = jax.random.uniform(kw, (fan_in, fan_out), jnp.float32, -bound, bound)
        b = jax.random.uniform(kb, (1, fan_out), jnp.float32, -bound, bound)
        return w, b

    w1, b1 = linear(ks[0], ks[1], in_dim, hidden1)
    w2, b2 = linear(ks[2], ks[3], hidden1, hidden2)
    w3, b3 = linear(ks[4], ks[5], hidden2, out_dim)
    return w1, b1, w2, b2, w3, b3


def mlp_block_ref(x, w1, b1, w2, b2, w3, b3):
    h = jax.nn.gelu(x @ w1 + b1, approximate=False)
    h = jax.nn.gelu(h @ w2 + b2, approximate=False)
    return h @ w3 + b3


if __name__ == "__main__":
    key = jax.random.PRNGKey(0)
    k_x, k_p, k_x2 = jax.random.split(key, 3)

    batch, seq, in_dim, hidden, out_dim = 2, 8, 16, 32, 16
    params = init_params(k_p, in_dim, hidden, hidden, out_dim)

    x = jax.random.normal(k_x, (batch, seq, in_dim), jnp.float32)
    y = mlp_block_pallas(x, *params)
    jax.block_until_ready(y)
    y_ref = mlp_block_ref(x, *params)
    assert y.shape == (batch, seq, out_dim)
    assert jnp.allclose(y, y_ref, atol=2e-5, rtol=2e-5)

    # Ragged / multi-tile shape to exercise zero-padding and grid > 1.
    x2 = jax.random.normal(k_x2, (3, 37, in_dim), jnp.float32)
    y2 = mlp_block_pallas(x2, *params)
    jax.block_until_ready(y2)
    y2_ref = mlp_block_ref(x2, *params)
    assert y2.shape == (3, 37, out_dim)
    assert jnp.allclose(y2, y2_ref, atol=2e-5, rtol=2e-5)

    print("KERNEL_OK")
</pallas_src>

<mosaic_0001>
module attributes {stable_mosaic.version = 11 : i64} {
  func.func @mlp_kernel(%arg0: i32, %arg1: memref<8x128xf32, #tpu.memory_space<vmem>>, %arg2: memref<128x256xf32, #tpu.memory_space<vmem>>, %arg3: memref<1x256xf32, #tpu.memory_space<vmem>>, %arg4: memref<256x256xf32, #tpu.memory_space<vmem>>, %arg5: memref<1x256xf32, #tpu.memory_space<vmem>>, %arg6: memref<256x128xf32, #tpu.memory_space<vmem>>, %arg7: memref<1x128xf32, #tpu.memory_space<vmem>>, %arg8: memref<8x128xf32, #tpu.memory_space<vmem>>) attributes {dimension_semantics = [#tpu.dimension_semantics<parallel>], iteration_bounds = array<i64: 1>, scalar_prefetch = 0 : i64, scratch_operands = 0 : i64, tpu.core_type = #tpu.core_type<tc>, window_params = [{transform_indices = @transform_0, window_bounds = array<i64: 8, 128>}, {pipeline_mode = #tpu.pipeline_mode<synchronous>, transform_indices = @transform_1, window_bounds = array<i64: 128, 256>}, {pipeline_mode = #tpu.pipeline_mode<synchronous>, transform_indices = @transform_2, window_bounds = array<i64: 1, 256>}, {pipeline_mode = #tpu.pipeline_mode<synchronous>, transform_indices = @transform_3, window_bounds = array<i64: 256, 256>}, {pipeline_mode = #tpu.pipeline_mode<synchronous>, transform_indices = @transform_4, window_bounds = array<i64: 1, 256>}, {pipeline_mode = #tpu.pipeline_mode<synchronous>, transform_indices = @transform_5, window_bounds = array<i64: 256, 128>}, {pipeline_mode = #tpu.pipeline_mode<synchronous>, transform_indices = @transform_6, window_bounds = array<i64: 1, 128>}, {transform_indices = @transform_7, window_bounds = array<i64: 8, 128>}]} {
    %c0 = arith.constant 0 : index
    %c0_0 = arith.constant 0 : index
    %0 = vector.load %arg1[%c0, %c0_0] : memref<8x128xf32, #tpu.memory_space<vmem>>, vector<8x128xf32>
    %c0_1 = arith.constant 0 : index
    %c0_2 = arith.constant 0 : index
    %1 = vector.load %arg2[%c0_1, %c0_2] : memref<128x256xf32, #tpu.memory_space<vmem>>, vector<128x256xf32>
    %cst = arith.constant dense<0.000000e+00> : vector<8x256xf32>
    %2 = tpu.matmul %0, %1, %cst {dimension_numbers = #tpu.dot_dimension_numbers<[1], [0], [0], [1], [0, 0, 1, 1], [], []>} : vector<8x128xf32>, vector<128x256xf32>, vector<8x256xf32> -> vector<8x256xf32>
    %c0_3 = arith.constant 0 : index
    %c0_4 = arith.constant 0 : index
    %3 = vector.load %arg3[%c0_3, %c0_4] : memref<1x256xf32, #tpu.memory_space<vmem>>, vector<1x256xf32>
    %4 = vector.broadcast %3 : vector<1x256xf32> to vector<8x256xf32>
    %5 = arith.addf %2, %4 : vector<8x256xf32>
    %cst_5 = arith.constant 5.000000e-01 : f32
    %6 = vector.broadcast %cst_5 : f32 to vector<8x256xf32>
    %7 = arith.mulf %6, %5 : vector<8x256xf32>
    %cst_6 = arith.constant 0.707106769 : f32
    %8 = vector.broadcast %cst_6 : f32 to vector<8x256xf32>
    %9 = arith.mulf %5, %8 : vector<8x256xf32>
    %10 = math.erf %9 : vector<8x256xf32>
    %cst_7 = arith.constant 1.000000e+00 : f32
    %11 = vector.broadcast %cst_7 : f32 to vector<8x256xf32>
    %12 = arith.addf %11, %10 : vector<8x256xf32>
    %13 = arith.mulf %7, %12 : vector<8x256xf32>
    %c0_8 = arith.constant 0 : index
    %c0_9 = arith.constant 0 : index
    %14 = vector.load %arg4[%c0_8, %c0_9] : memref<256x256xf32, #tpu.memory_space<vmem>>, vector<256x256xf32>
    %cst_10 = arith.constant dense<0.000000e+00> : vector<8x256xf32>
    %15 = tpu.matmul %13, %14, %cst_10 {dimension_numbers = #tpu.dot_dimension_numbers<[1], [0], [0], [1], [0, 0, 1, 1], [], []>} : vector<8x256xf32>, vector<256x256xf32>, vector<8x256xf32> -> vector<8x256xf32>
    %c0_11 = arith.constant 0 : index
    %c0_12 = arith.constant 0 : index
    %16 = vector.load %arg5[%c0_11, %c0_12] : memref<1x256xf32, #tpu.memory_space<vmem>>, vector<1x256xf32>
    %17 = vector.broadcast %16 : vector<1x256xf32> to vector<8x256xf32>
    %18 = arith.addf %15, %17 : vector<8x256xf32>
    %cst_13 = arith.constant 5.000000e-01 : f32
    %19 = vector.broadcast %cst_13 : f32 to vector<8x256xf32>
    %20 = arith.mulf %19, %18 : vector<8x256xf32>
    %cst_14 = arith.constant 0.707106769 : f32
    %21 = vector.broadcast %cst_14 : f32 to vector<8x256xf32>
    %22 = arith.mulf %18, %21 : vector<8x256xf32>
    %23 = math.erf %22 : vector<8x256xf32>
    %cst_15 = arith.constant 1.000000e+00 : f32
    %24 = vector.broadcast %cst_15 : f32 to vector<8x256xf32>
    %25 = arith.addf %24, %23 : vector<8x256xf32>
    %26 = arith.mulf %20, %25 : vector<8x256xf32>
    %c0_16 = arith.constant 0 : index
    %c0_17 = arith.constant 0 : index
    %27 = vector.load %arg6[%c0_16, %c0_17] : memref<256x128xf32, #tpu.memory_space<vmem>>, vector<256x128xf32>
    %cst_18 = arith.constant dense<0.000000e+00> : vector<8x128xf32>
    %28 = tpu.matmul %26, %27, %cst_18 {dimension_numbers = #tpu.dot_dimension_numbers<[1], [0], [0], [1], [0, 0, 1, 1], [], []>} : vector<8x256xf32>, vector<256x128xf32>, vector<8x128xf32> -> vector<8x128xf32>
    %c0_19 = arith.constant 0 : index
    %c0_20 = arith.constant 0 : index
    %29 = vector.load %arg7[%c0_19, %c0_20] : memref<1x128xf32, #tpu.memory_space<vmem>>, vector<1x128xf32>
    %30 = vector.broadcast %29 : vector<1x128xf32> to vector<8x128xf32>
    %31 = arith.addf %28, %30 : vector<8x128xf32>
    %c0_21 = arith.constant 0 : index
    %c0_22 = arith.constant 0 : index
    %32 = vector.load %arg8[%c0_21, %c0_22] : memref<8x128xf32, #tpu.memory_space<vmem>>, vector<8x128xf32>
    tpu.vector_store %arg8[%c0_21, %c0_22], %31 {strides = array<i32>} : memref<8x128xf32, #tpu.memory_space<vmem>>, vector<8x128xf32>,
    return
  }
  func.func @transform_0(%arg0: i32) -> (i32, i32) {
    %c0_i32 = arith.constant 0 : i32
    %c0_i32_0 = arith.constant 0 : i32
    return %arg0, %c0_i32 : i32, i32
  }
  func.func @transform_1(%arg0: i32) -> (i32, i32) {
    %c0_i32 = arith.constant 0 : i32
    %c0_i32_0 = arith.constant 0 : i32
    %c0_i32_1 = arith.constant 0 : i32
    return %c0_i32, %c0_i32_0 : i32, i32
  }
  func.func @transform_2(%arg0: i32) -> (i32, i32) {
    %c0_i32 = arith.constant 0 : i32
    %c0_i32_0 = arith.constant 0 : i32
    %c0_i32_1 = arith.constant 0 : i32
    return %c0_i32, %c0_i32_0 : i32, i32
  }
  func.func @transform_3(%arg0: i32) -> (i32, i32) {
    %c0_i32 = arith.constant 0 : i32
    %c0_i32_0 = arith.constant 0 : i32
    %c0_i32_1 = arith.constant 0 : i32
    return %c0_i32, %c0_i32_0 : i32, i32
  }
  func.func @transform_4(%arg0: i32) -> (i32, i32) {
    %c0_i32 = arith.constant 0 : i32
    %c0_i32_0 = arith.constant 0 : i32
    %c0_i32_1 = arith.constant 0 : i32
    return %c0_i32, %c0_i32_0 : i32, i32
  }
  func.func @transform_5(%arg0: i32) -> (i32, i32) {
    %c0_i32 = arith.constant 0 : i32
    %c0_i32_0 = arith.constant 0 : i32
    %c0_i32_1 = arith.constant 0 : i32
    return %c0_i32, %c0_i32_0 : i32, i32
  }
  func.func @transform_6(%arg0: i32) -> (i32, i32) {
    %c0_i32 = arith.constant 0 : i32
    %c0_i32_0 = arith.constant 0 : i32
    %c0_i32_1 = arith.constant 0 : i32
    return %c0_i32, %c0_i32_0 : i32, i32
  }
  func.func @transform_7(%arg0: i32) -> (i32, i32) {
    %c0_i32 = arith.constant 0 : i32
    %c0_i32_0 = arith.constant 0 : i32
    return %arg0, %c0_i32 : i32, i32
  }
}

</mosaic_0001>

<bundles_post_ra>
// kernel: mlp_block_pallas.1
= control target key start
LH: loop header
LB: loop body
LE: loop exit
PB: predicated region body
PF: predicated region fallthrough
CT: control target
= control target key end

     0   :  { %s1048_s1 = inlined_call_operand.vmem [shape: f32[128,256], index: 1, kind: input, shape index: {}]   ;;  %s1049_s0 = inlined_call_operand.vmem [shape: f32[8,128], index: 0, kind: input, shape index: {}]   ;;  %s1050_s3 = inlined_call_operand.vmem [shape: f32[256,256], index: 3, kind: input, shape index: {}]   ;;  %s1051_s2 = inlined_call_operand.vmem [shape: f32[1,256], index: 2, kind: input, shape index: {}]   ;;  %s1052_s4 = inlined_call_operand.vmem [shape: f32[1,256], index: 4, kind: input, shape index: {}]   ;;  %s1053_s5 = inlined_call_operand.vmem [shape: f32[256,128], index: 5, kind: input, shape index: {}]   ;;  %s1054_s6 = inlined_call_operand.vmem [shape: f32[1,128], index: 6, kind: input, shape index: {}]   ;;  %s1055_s7 = inlined_call_operand.vmem [shape: f32[8,128], index: 7, kind: output, shape index: {}]  }
   0x1   :  { %v57_v0 = vld [vmem:[%s1048_s1 + $0xf0] sm:$0xff]  ;;  %v58_v1 = vld [vmem:[%s1048_s1 + $0xf8] sm:$0xff]  ;;  %v55_v2 = vld [vmem:[%s1048_s1 + $0xe0] sm:$0xff] }
   0x2   :  { %65 = vmatpush.msra.mxu0 %v57_v0  ;;  %85 = vmatpush.msra.mxu1 %v58_v1  ;;  %v56_v3 = vld [vmem:[%s1048_s1 + $0xe8] sm:$0xff]  ;;  %v53_v4 = vld [vmem:[%s1048_s1 + $0xd0] sm:$0xff]  ;;  %v54_v5 = vld [vmem:[%s1048_s1 + $0xd8] sm:$0xff] }
   0x3   :  { %v51_v6 = vld [vmem:[%s1048_s1 + $0xc0] sm:$0xff]  ;;  %v52_v7 = vld [vmem:[%s1048_s1 + $0xc8] sm:$0xff]  ;;  %v49_v8 = vld [vmem:[%s1048_s1 + $0xb0] sm:$0xff] }
   0x4   :  { %66 = vmatpush.msra.mxu0 %v55_v2  ;;  %86 = vmatpush.msra.mxu1 %v56_v3  ;;  %v50_v9 = vld [vmem:[%s1048_s1 + $0xb8] sm:$0xff]  ;;  %v47_v10 = vld [vmem:[%s1048_s1 + $0xa0] sm:$0xff]  ;;  %v48_v11 = vld [vmem:[%s1048_s1 + $0xa8] sm:$0xff] }
   0x5   :  { %v45_v12 = vld [vmem:[%s1048_s1 + $0x90] sm:$0xff]  ;;  %v46_v13 = vld [vmem:[%s1048_s1 + $0x98] sm:$0xff]  ;;  %v43_v14 = vld [vmem:[%s1048_s1 + $0x80] sm:$0xff] }
   0x6   :  { %67 = vmatpush.msra.mxu0 %v53_v4  ;;  %87 = vmatpush.msra.mxu1 %v54_v5  ;;  %v44_v15 = vld [vmem:[%s1048_s1 + $0x88] sm:$0xff]  ;;  %v41_v16 = vld [vmem:[%s1048_s1 + $0x70] sm:$0xff]  ;;  %v42_v17 = vld [vmem:[%s1048_s1 + $0x78] sm:$0xff] }
   0x7   :  { %v39_v18 = vld [vmem:[%s1048_s1 + $0x60] sm:$0xff]  ;;  %v40_v19 = vld [vmem:[%s1048_s1 + $0x68] sm:$0xff]  ;;  %v37_v20 = vld [vmem:[%s1048_s1 + $0x50] sm:$0xff] }
   0x8   :  { %68 = vmatpush.msra.mxu0 %v51_v6  ;;  %88 = vmatpush.msra.mxu1 %v52_v7  ;;  %v38_v21 = vld [vmem:[%s1048_s1 + $0x58] sm:$0xff]  ;;  %v35_v22 = vld [vmem:[%s1048_s1 + $0x40] sm:$0xff]  ;;  %v36_v23 = vld [vmem:[%s1048_s1 + $0x48] sm:$0xff] }
   0x9   :  { %v33_v24 = vld [vmem:[%s1048_s1 + $0x30] sm:$0xff]  ;;  %v34_v25 = vld [vmem:[%s1048_s1 + $0x38] sm:$0xff]  ;;  %v31_v26 = vld [vmem:[%s1048_s1 + $0x20] sm:$0xff] }
   0xa   :  { %69 = vmatpush.msra.mxu0 %v49_v8  ;;  %89 = vmatpush.msra.mxu1 %v50_v9  ;;  %v32_v27 = vld [vmem:[%s1048_s1 + $0x28] sm:$0xff]  ;;  %v29_v28 = vld [vmem:[%s1048_s1 + $0x10] sm:$0xff]  ;;  %v30_v29 = vld [vmem:[%s1048_s1 + $0x18] sm:$0xff] }
   0xb   :  { %v27_v30 = vld [vmem:[%s1048_s1] sm:$0xff]  ;;  %v28_v31 = vld [vmem:[%s1048_s1 + $0x8] sm:$0xff]  ;;  %v223_v33 = vld [vmem:[%s1050_s3 + $0xf0] sm:$0xff] }
   0xc   :  { %70 = vmatpush.msra.mxu0 %v47_v10  ;;  %90 = vmatpush.msra.mxu1 %v48_v11  ;;  %v26_v32 = vld [vmem:[%s1049_s0] sm:$0xff]  ;;  %v255_v34 = vld [vmem:[%s1050_s3 + $0x1f0] sm:$0xff]  ;;  %v224_v35 = vld [vmem:[%s1050_s3 + $0xf8] sm:$0xff] }
   0xd   :  { %263 = vmatpush.msra.mxu2 %v223_v33  ;;  %283 = vmatpush.msra.mxu3 %v255_v34  ;;  %v256_v36 = vld [vmem:[%s1050_s3 + $0x1f8] sm:$0xff]  ;;  %v221_v37 = vld [vmem:[%s1050_s3 + $0xe0] sm:$0xff]  ;;  %v222_v39 = vld [vmem:[%s1050_s3 + $0xe8] sm:$0xff] }
   0xe   :  { %71 = vmatpush.msra.mxu0 %v45_v12  ;;  %91 = vmatpush.msra.mxu1 %v46_v13  ;;  %v253_v38 = vld [vmem:[%s1050_s3 + $0x1e0] sm:$0xff]  ;;  %v254_v41 = vld [vmem:[%s1050_s3 + $0x1e8] sm:$0xff]  ;;  %v219_v42 = vld [vmem:[%s1050_s3 + $0xd0] sm:$0xff] }
   0xf   :  { %v59_v40 = vld [vmem:[%s1051_s2] sm:$0x3]  ;;  %264 = vmatpush.msra.mxu2 %v221_v37  ;;  %284 = vmatpush.msra.mxu3 %v253_v38  ;;  %v251_v43 = vld [vmem:[%s1050_s3 + $0x1d0] sm:$0xff]  ;;  %v220_v44 = vld [vmem:[%s1050_s3 + $0xd8] sm:$0xff] }
  0x10   :  { %72 = vmatpush.msra.mxu0 %v43_v14  ;;  %92 = vmatpush.msra.mxu1 %v44_v15  ;;  %v252_v45 = vld [vmem:[%s1050_s3 + $0x1d8] sm:$0xff]  ;;  %v217_v46 = vld [vmem:[%s1050_s3 + $0xc0] sm:$0xff]  ;;  %v218_v48 = vld [vmem:[%s1050_s3 + $0xc8] sm:$0xff]  ;;  %v61_v49 = vperm.slane %v59_v40, 0  ;;  %v62_v50 = vperm.slane %v59_v40, 1 }
  0x11   :  { %265 = vmatpush.msra.mxu2 %v219_v42  ;;  %285 = vmatpush.msra.mxu3 %v251_v43  ;;  %v249_v47 = vld [vmem:[%s1050_s3 + $0x1c0] sm:$0xff]  ;;  %v250_v51 = vld [vmem:[%s1050_s3 + $0x1c8] sm:$0xff]  ;;  %v215_v52 = vld [vmem:[%s1050_s3 + $0xb0] sm:$0xff] }
  0x12   :  { %73 = vmatpush.msra.mxu0 %v41_v16  ;;  %93 = vmatpush.msra.mxu1 %v42_v17  ;;  %v247_v53 = vld [vmem:[%s1050_s3 + $0x1b0] sm:$0xff]  ;;  %v216_v54 = vld [vmem:[%s1050_s3 + $0xb8] sm:$0xff]  ;;  %v213_v56 = vld [vmem:[%s1050_s3 + $0xa0] sm:$0xff] }
  0x13   :  { %266 = vmatpush.msra.mxu2 %v217_v46  ;;  %286 = vmatpush.msra.mxu3 %v249_v47  ;;  %v248_v55 = vld [vmem:[%s1050_s3 + $0x1b8] sm:$0xff]  ;;  %v245_v57 = vld [vmem:[%s1050_s3 + $0x1a0] sm:$0xff]  ;;  %v214_v58 = vld [vmem:[%s1050_s3 + $0xa8] sm:$0xff] }
  0x14   :  { %74 = vmatpush.msra.mxu0 %v39_v18  ;;  %94 = vmatpush.msra.mxu1 %v40_v19  ;;  %v246_v59 = vld [vmem:[%s1050_s3 + $0x1a8] sm:$0xff]  ;;  %v211_v62 = vld [vmem:[%s1050_s3 + $0x90] sm:$0xff]  ;;  %v212_v2 = vld [vmem:[%s1050_s3 + $0x98] sm:$0xff] }
  0x15   :  { %267 = vmatpush.msra.mxu2 %v215_v52  ;;  %287 = vmatpush.msra.mxu3 %v247_v53  ;;  %v243_v63 = vld [vmem:[%s1050_s3 + $0x190] sm:$0xff]  ;;  %v244_v3 = vld [vmem:[%s1050_s3 + $0x198] sm:$0xff]  ;;  %v209_v4 = vld [vmem:[%s1050_s3 + $0x80] sm:$0xff] }
  0x16   :  { %75 = vmatpush.msra.mxu0 %v37_v20  ;;  %95 = vmatpush.msra.mxu1 %v38_v21  ;;  %v241_v5 = vld [vmem:[%s1050_s3 + $0x180] sm:$0xff]  ;;  %v210_v8 = vld [vmem:[%s1050_s3 + $0x88] sm:$0xff]  ;;  %v207_v10 = vld [vmem:[%s1050_s3 + $0x70] sm:$0xff] }
  0x17   :  { %268 = vmatpush.msra.mxu2 %v213_v56  ;;  %288 = vmatpush.msra.mxu3 %v245_v57  ;;  %v242_v9 = vld [vmem:[%s1050_s3 + $0x188] sm:$0xff]  ;;  %v239_v11 = vld [vmem:[%s1050_s3 + $0x170] sm:$0xff]  ;;  %v208_v14 = vld [vmem:[%s1050_s3 + $0x78] sm:$0xff] }
  0x18   :  { %76 = vmatpush.msra.mxu0 %v35_v22  ;;  %96 = vmatpush.msra.mxu1 %v36_v23  ;;  %v240_v15 = vld [vmem:[%s1050_s3 + $0x178] sm:$0xff]  ;;  %v205_v16 = vld [vmem:[%s1050_s3 + $0x60] sm:$0xff]  ;;  %v206_v20 = vld [vmem:[%s1050_s3 + $0x68] sm:$0xff] }
  0x19   :  { %269 = vmatpush.msra.mxu2 %v211_v62  ;;  %289 = vmatpush.msra.mxu3 %v243_v63  ;;  %v237_v17 = vld [vmem:[%s1050_s3 + $0x160] sm:$0xff]  ;;  %v238_v21 = vld [vmem:[%s1050_s3 + $0x168] sm:$0xff]  ;;  %v203_v22 = vld [vmem:[%s1050_s3 + $0x50] sm:$0xff] }
  0x1a   :  { %77 = vmatpush.msra.mxu0 %v33_v24  ;;  %97 = vmatpush.msra.mxu1 %v34_v25  ;;  %v235_v23 = vld [vmem:[%s1050_s3 + $0x150] sm:$0xff]  ;;  %v202_v33 = vld [vmem:[%s1050_s3 + $0x48] sm:$0xff]  ;;  %v232_v40 = vld [vmem:[%s1050_s3 + $0x138] sm:$0xff] }
  0x1b   :  { %270 = vmatpush.msra.mxu2 %v209_v4  ;;  %290 = vmatpush.msra.mxu3 %v241_v5  ;;  %v234_v34 = vld [vmem:[%s1050_s3 + $0x148] sm:$0xff]  ;;  %v197_v42 = vld [vmem:[%s1050_s3 + $0x20] sm:$0xff]  ;;  %v196_v53 = vld [vmem:[%s1050_s3 + $0x18] sm:$0xff] }
  0x1c   :  { %78 = vmatpush.msra.mxu0 %v31_v26  ;;  %98 = vmatpush.msra.mxu1 %v32_v27  ;;  %v204_v26 = vld [vmem:[%s1050_s3 + $0x58] sm:$0xff]  ;;  %v229_v43 = vld [vmem:[%s1050_s3 + $0x120] sm:$0xff]  ;;  %v198_v46 = vld [vmem:[%s1050_s3 + $0x28] sm:$0xff] }
  0x1d   :  { %271 = vmatpush.msra.mxu2 %v207_v10  ;;  %291 = vmatpush.msra.mxu3 %v239_v11  ;;  %v236_v27 = vld [vmem:[%s1050_s3 + $0x158] sm:$0xff]  ;;  %v230_v47 = vld [vmem:[%s1050_s3 + $0x128] sm:$0xff]  ;;  %v193_v56 = vld [vmem:[%s1050_s3] sm:$0xff] }
  0x1e   :  { %79 = vmatpush.msra.mxu0 %v29_v28  ;;  %99 = vmatpush.msra.mxu1 %v30_v29  ;;  %v201_v28 = vld [vmem:[%s1050_s3 + $0x40] sm:$0xff] }
  0x1f   :  { %272 = vmatpush.msra.mxu2 %v205_v16  ;;  %292 = vmatpush.msra.mxu3 %v237_v17  ;;  %v233_v29 = vld [vmem:[%s1050_s3 + $0x140] sm:$0xff] }
  0x20   :  { %80 = vmatpush.msra.mxu0 %v27_v30  ;;  %100 = vmatpush.msra.mxu1 %v28_v31  ;;  %v225_v57 = vld [vmem:[%s1050_s3 + $0x100] sm:$0xff] }
  0x21   :  { %81 = vmatmul.f32.vlgmr.msra.gmra.mxu0 %v26_v32  ;;  %101 = vmatmul.f32.vlgmr.msra.gmra.mxu1 %v26_v32 }
  0x22   :  { %303 = vmatpush.msrb.mxu0 %v224_v35  ;;  %323 = vmatpush.msrb.mxu1 %v256_v36  ;;  %v199_v35 = vld [vmem:[%s1050_s3 + $0x30] sm:$0xff] }
  0x23   :  { %273 = vmatpush.msra.mxu2 %v203_v22  ;;  %293 = vmatpush.msra.mxu3 %v235_v23  ;;  %v231_v36 = vld [vmem:[%s1050_s3 + $0x130] sm:$0xff] }
  0x24   :  { %304 = vmatpush.msrb.mxu0 %v222_v39  ;;  %324 = vmatpush.msrb.mxu1 %v254_v41  ;;  %v200_v39 = vld [vmem:[%s1050_s3 + $0x38] sm:$0xff] }
  0x25   :  { %274 = vmatpush.msra.mxu2 %v201_v28  ;;  %294 = vmatpush.msra.mxu3 %v233_v29 }
  0x26   :  { %305 = vmatpush.msrb.mxu0 %v220_v44  ;;  %325 = vmatpush.msrb.mxu1 %v252_v45 }
  0x27   :  { %275 = vmatpush.msra.mxu2 %v199_v35  ;;  %295 = vmatpush.msra.mxu3 %v231_v36 }
  0x28   :  { %306 = vmatpush.msrb.mxu0 %v218_v48  ;;  %326 = vmatpush.msrb.mxu1 %v250_v51 }
  0x29   :  { %276 = vmatpush.msra.mxu2 %v197_v42  ;;  %296 = vmatpush.msra.mxu3 %v229_v43 }
  0x2a   :  { %307 = vmatpush.msrb.mxu0 %v216_v54  ;;  %327 = vmatpush.msrb.mxu1 %v248_v55  ;;  %v228_v54 = vld [vmem:[%s1050_s3 + $0x118] sm:$0xff] }
  0x2c   :  { %308 = vmatpush.msrb.mxu0 %v214_v58  ;;  %328 = vmatpush.msrb.mxu1 %v246_v59 }
  0x2e   :  { %309 = vmatpush.msrb.mxu0 %v212_v2  ;;  %329 = vmatpush.msrb.mxu1 %v244_v3 }
  0x30   :  { %310 = vmatpush.msrb.mxu0 %v210_v8  ;;  %330 = vmatpush.msrb.mxu1 %v242_v9 }
  0x32   :  { %311 = vmatpush.msrb.mxu0 %v208_v14  ;;  %331 = vmatpush.msrb.mxu1 %v240_v15 }
  0x34   :  { %312 = vmatpush.msrb.mxu0 %v206_v20  ;;  %332 = vmatpush.msrb.mxu1 %v238_v21 }
  0x36   :  { %313 = vmatpush.msrb.mxu0 %v204_v26  ;;  %333 = vmatpush.msrb.mxu1 %v236_v27 }
  0x38   :  { %314 = vmatpush.msrb.mxu0 %v202_v33  ;;  %334 = vmatpush.msrb.mxu1 %v234_v34 }
  0x3a   :  { %315 = vmatpush.msrb.mxu0 %v200_v39  ;;  %335 = vmatpush.msrb.mxu1 %v232_v40 }
  0x3c   :  { %316 = vmatpush.msrb.mxu0 %v198_v46  ;;  %336 = vmatpush.msrb.mxu1 %v230_v47 }
  0x3e   :  { %317 = vmatpush.msrb.mxu0 %v196_v53  ;;  %337 = vmatpush.msrb.mxu1 %v228_v54 }
  0x9e   :  { %v82_v60 = vpop.f32.mrf.mxu0  ;;  %v102_v61 = vpop.f32.mrf.mxu1 }
  0x9f   :  { %v745_v0 = vadd.f32 %v82_v60, %v61_v49  ;;  %v747_v1 = vadd.f32 %v102_v61, %v62_v50  ;;  %v195_v49 = vld [vmem:[%s1050_s3 + $0x10] sm:$0xff]  ;;  %v194_v60 = vld [vmem:[%s1050_s3 + $0x8] sm:$0xff] }
  0xa0   :  { %v227_v50 = vld [vmem:[%s1050_s3 + $0x110] sm:$0xff]  ;;  %277 = vmatpush.msra.mxu2 %v195_v49  ;;  %v226_v61 = vld [vmem:[%s1050_s3 + $0x108] sm:$0xff]  ;;  %318 = vmatpush.msrb.mxu0 %v194_v60 }
  0xa1   :  { %v762_v6 = vmul.f32 0.70710677, %v745_v0  ;;  %v765_v7 = vmul.f32 0.70710677, %v747_v1  ;;  %297 = vmatpush.msra.mxu3 %v227_v50  ;;  %338 = vmatpush.msrb.mxu1 %v226_v61  ;;  %v106_v54 = vmul.f32 0.5, %v747_v1  ;;  %v461_v1 = vld [vmem:[%s1053_s5 + $0xf0] sm:$0xff] }
  0xa2   :  { %278 = vmatpush.msra.mxu2 %v193_v56  ;;  %v446_v61 = vld [vmem:[%s1053_s5 + $0x78] sm:$0xff] }
  0xa3   :  { %v109_v12 = vmul.f32 %v762_v6, %v762_v6  ;;  %v149_v13 = vmul.f32 %v765_v7, %v765_v7  ;;  %298 = vmatpush.msra.mxu3 %v225_v57  ;;  %v462_v57 = vld [vmem:[%s1053_s5 + $0xf8] sm:$0xff] }
  0xa4   :  { %467 = vmatpush.msrb.mxu2 %v446_v61 }
  0xa5   :  { %v795_v18 = vmin.f32 %v109_v12, 16.0  ;;  %v797_v19 = vmin.f32 %v149_v13, 16.0  ;;  %487 = vmatpush.msrb.mxu3 %v462_v57  ;;  %v433_v57 = vld [vmem:[%s1053_s5 + $0x10] sm:$0xff] }
  0xa7   :  { %v111_v24 = vmul.f32 2.1237322e-06, %v795_v18  ;;  %v151_v25 = vmul.f32 2.1237322e-06, %v797_v19  ;;  %v122_v30 = vmul.f32 3.8918573e-05, %v795_v18  ;;  %488 = vmatpush.msrb.mxu3 %v461_v1 }
  0xa8   :  { %v162_v41 = vmul.f32 3.8918573e-05, %v797_v19 }
  0xa9   :  { %v112_v31 = vadd.f32 0.00028619796, %v111_v24  ;;  %v152_v32 = vadd.f32 0.00028619796, %v151_v25  ;;  %v123_v37 = vadd.f32 0.001143296, %v122_v30 }
  0xaa   :  { %v163_v48 = vadd.f32 0.001143296, %v162_v41 }
  0xab   :  { %v113_v38 = vmul.f32 %v112_v31, %v795_v18  ;;  %v124_v44 = vmul.f32 %v123_v37, %v795_v18  ;;  %v153_v45 = vmul.f32 %v152_v32, %v797_v19 }
  0xac   :  { %v164_v55 = vmul.f32 %v163_v48, %v797_v19 }
  0xad   :  { %v125_v51 = vadd.f32 0.014752088, %v124_v44  ;;  %v114_v52 = vadd.f32 0.0036580483, %v113_v38  ;;  %v154_v59 = vadd.f32 0.0036580483, %v153_v45 }
  0xae   :  { %v165_v62 = vadd.f32 0.014752088, %v164_v55 }
  0xaf   :  { %v126_v58 = vmul.f32 %v125_v51, %v795_v18  ;;  %v115_v2 = vmul.f32 %v114_v52, %v795_v18  ;;  %v155_v5 = vmul.f32 %v154_v59, %v797_v19  ;;  %v105_v51 = vmul.f32 0.5, %v745_v0 }
  0xb0   :  { %v166_v3 = vmul.f32 %v165_v62, %v797_v19  ;;  %v459_v62 = vld [vmem:[%s1053_s5 + $0xe0] sm:$0xff] }
  0xb1   :  { %v127_v63 = vadd.f32 0.112945676, %v126_v58  ;;  %v116_v10 = vadd.f32 0.05243302, %v115_v2  ;;  %v156_v13 = vadd.f32 0.05243302, %v155_v5 }
  0xb2   :  { %v167_v8 = vadd.f32 0.112945676, %v166_v3  ;;  %v460_v58 = vld [vmem:[%s1053_s5 + $0xe8] sm:$0xff]  ;;  %v445_v3 = vld [vmem:[%s1053_s5 + $0x70] sm:$0xff] }
  0xb3   :  { %v128_v4 = vmul.f32 %v127_v63, %v795_v18  ;;  %v117_v16 = vmul.f32 %v116_v10, %v795_v18  ;;  %v157_v20 = vmul.f32 %v156_v13, %v797_v19  ;;  %489 = vmatpush.msrb.mxu3 %v460_v58  ;;  %468 = vmatpush.msrb.mxu2 %v445_v3  ;;  %v443_v13 = vld [vmem:[%s1053_s5 + $0x60] sm:$0xff] }
  0xb4   :  { %v168_v11 = vmul.f32 %v167_v8, %v797_v19  ;;  %v444_v8 = vld [vmem:[%s1053_s5 + $0x68] sm:$0xff] }
  0xb5   :  { %v129_v9 = vadd.f32 0.4994258, %v128_v4  ;;  %v118_v22 = vadd.f32 0.18741608, %v117_v16  ;;  %v158_v23 = vadd.f32 0.18741608, %v157_v20  ;;  %490 = vmatpush.msrb.mxu3 %v459_v62  ;;  %469 = vmatpush.msrb.mxu2 %v444_v8 }
  0xb6   :  { %v169_v14 = vadd.f32 0.4994258, %v168_v11  ;;  %v458_v4 = vld [vmem:[%s1053_s5 + $0xd8] sm:$0xff]  ;;  %v455_v20 = vld [vmem:[%s1053_s5 + $0xc0] sm:$0xff] }
  0xb7   :  { %v130_v12 = vmul.f32 %v129_v9, %v795_v18  ;;  %v119_v25 = vmul.f32 %v118_v22, %v795_v18  ;;  %v159_v28 = vmul.f32 %v158_v23, %v797_v19  ;;  %491 = vmatpush.msrb.mxu3 %v458_v4  ;;  %v457_v9 = vld [vmem:[%s1053_s5 + $0xd0] sm:$0xff]  ;;  %470 = vmatpush.msrb.mxu2 %v443_v13 }
  0xb8   :  { %v170_v17 = vmul.f32 %v169_v14, %v797_v19  ;;  %v456_v14 = vld [vmem:[%s1053_s5 + $0xc8] sm:$0xff]  ;;  %v441_v23 = vld [vmem:[%s1053_s5 + $0x50] sm:$0xff] }
  0xb9   :  { %v131_v15 = vadd.f32 1.0, %v130_v12  ;;  %v120_v32 = vadd.f32 1.1283791, %v119_v25  ;;  %v160_v36 = vadd.f32 1.1283791, %v159_v28  ;;  %492 = vmatpush.msrb.mxu3 %v457_v9  ;;  %v440_v28 = vld [vmem:[%s1053_s5 + $0x48] sm:$0xff] }
  0xba   :  { %v171_v21 = vadd.f32 1.0, %v170_v17  ;;  %v442_v17 = vld [vmem:[%s1053_s5 + $0x58] sm:$0xff] }
  0xbb   :  { %517 = vrcp.f32 %v131_v15  ;;  %v143_v30 = vand.u32 2147483648, %v131_v15  ;;  %v141_v34 = vand.u32 2147483647, %v131_v15  ;;  %vm137_vm1 = vweird.f32 %v131_v15  ;;  %493 = vmatpush.msrb.mxu3 %v456_v14  ;;  %471 = vmatpush.msrb.mxu2 %v442_v17 }
  0xbc   :  { %519 = vrcp.f32 %v171_v21  ;;  %v183_v38 = vand.u32 2147483648, %v171_v21  ;;  %v181_v18 = vand.u32 2147483647, %v171_v21  ;;  %v121_v41 = vmul.f32 %v120_v32, %v762_v6 }
  0xbd   :  { %v144_v39 = vor.u32 1.1754944e-38, %v143_v30  ;;  %vm142_vm4 = vcmp.eq.f32.partialorder %v141_v34, 8.507059e+37  ;;  %vm177_vm5 = vweird.f32 %v171_v21  ;;  %v161_v46 = vmul.f32 %v160_v36, %v765_v7  ;;  %v257_v7 = vld [vmem:[%s1052_s4] sm:$0x3]  ;;  %494 = vmatpush.msrb.mxu3 %v455_v20  ;;  %472 = vmatpush.msrb.mxu2 %v441_v23  ;;  %v452_v34 = vld [vmem:[%s1053_s5 + $0xa8] sm:$0xff] }
  0xbe   :  { %v184_v45 = vor.u32 1.1754944e-38, %v183_v38  ;;  %vm182_vm7 = vcmp.eq.f32.partialorder %v181_v18, 8.507059e+37  ;;  %v260_v0 = vperm.slane %v257_v7, 1  ;;  %v259_v2 = vperm.slane %v257_v7, 0  ;;  %v438_v38 = vld [vmem:[%s1053_s5 + $0x38] sm:$0xff] }
  0xbf   :  { %473 = vmatpush.msrb.mxu2 %v440_v28 }
  0xc1   :  { %v518_v24 = vpop.eup %517 }
  0xc2   :  { %v133_v26 = vmul.f32 %v518_v24, %v131_v15  ;;  %v520_v27 = vpop.eup %519  ;;  %vm138_vm0 = vweird.f32 %v518_v24 }
  0xc3   :  { %v173_v31 = vmul.f32 %v520_v27, %v171_v21  ;;  %vm139_vm2 = vmor %vm137_vm1, %vm138_vm0  ;;  %vm178_vm3 = vweird.f32 %v520_v27 }
  0xc4   :  { %v134_v29 = vsub.f32 1.0, %v133_v26  ;;  %vm179_vm6 = vmor %vm177_vm5, %vm178_vm3 }
  0xc5   :  { %v174_v35 = vsub.f32 1.0, %v173_v31 }
  0xc6   :  { %v135_v33 = vmul.f32 %v518_v24, %v134_v29  ;;  %v453_v29 = vld [vmem:[%s1053_s5 + $0xb0] sm:$0xff] }
  0xc7   :  { %v175_v40 = vmul.f32 %v520_v27, %v174_v35 }
  0xc8   :  { %v136_v37 = vadd.f32 %v518_v24, %v135_v33  ;;  %v439_v33 = vld [vmem:[%s1053_s5 + $0x40] sm:$0xff] }
  0xc9   :  { %v176_v43 = vadd.f32 %v520_v27, %v175_v40  ;;  %474 = vmatpush.msrb.mxu2 %v439_v33 }
  0xca   :  { %v140_v19 = vsel %vm139_vm2, %v518_v24, %v136_v37  ;;  %v454_v24 = vld [vmem:[%s1053_s5 + $0xb8] sm:$0xff] }
  0xcb   :  { %v145_v42 = vsel %vm142_vm4, %v144_v39, %v140_v19  ;;  %v180_v47 = vsel %vm179_vm6, %v520_v27, %v176_v43  ;;  %495 = vmatpush.msrb.mxu3 %v454_v24  ;;  %v451_v39 = vld [vmem:[%s1053_s5 + $0xa0] sm:$0xff]  ;;  %475 = vmatpush.msrb.mxu2 %v438_v38  ;;  %v450_v43 = vld [vmem:[%s1053_s5 + $0x98] sm:$0xff] }
  0xcc   :  { %v146_v44 = vmul.f32 %v145_v42, %v121_v41  ;;  %v185_v49 = vsel %vm182_vm7, %v184_v45, %v180_v47  ;;  %v437_v42 = vld [vmem:[%s1053_s5 + $0x30] sm:$0xff]  ;;  %v436_v47 = vld [vmem:[%s1053_s5 + $0x28] sm:$0xff] }
  0xcd   :  { %v186_v50 = vmul.f32 %v185_v49, %v161_v46  ;;  %496 = vmatpush.msrb.mxu3 %v453_v29  ;;  %476 = vmatpush.msrb.mxu2 %v437_v42 }
  0xce   :  { %v512_v48 = vclamps-f32 %v146_v44, 1.0 }
  0xcf   :  { %v513_v53 = vclamps-f32 %v186_v50, 1.0  ;;  %497 = vmatpush.msrb.mxu3 %v452_v34  ;;  %477 = vmatpush.msrb.mxu2 %v436_v47 }
  0xd0   :  { %v189_v52 = vadd.f32 1.0, %v512_v48  ;;  %v449_v48 = vld [vmem:[%s1053_s5 + $0x90] sm:$0xff] }
  0xd1   :  { %v190_v55 = vadd.f32 1.0, %v513_v53  ;;  %498 = vmatpush.msrb.mxu3 %v451_v39  ;;  %v435_v53 = vld [vmem:[%s1053_s5 + $0x20] sm:$0xff] }
  0xd2   :  { %v191_v6 = vmul.f32 %v189_v52, %v105_v51  ;;  %478 = vmatpush.msrb.mxu2 %v435_v53 }
  0xd3   :  { %v192_v56 = vmul.f32 %v190_v55, %v106_v54  ;;  %499 = vmatpush.msrb.mxu3 %v450_v43  ;;  %v434_v55 = vld [vmem:[%s1053_s5 + $0x18] sm:$0xff] }
  0xd4   :  { %279 = vmatmul.f32.vlgmr.msra.gmra.mxu2 %v191_v6  ;;  %319 = vmatmul.f32.vlgmr.msrb.gmra.mxu0 %v191_v6  ;;  %v448_v6 = vld [vmem:[%s1053_s5 + $0x88] sm:$0xff] }
  0xd5   :  { %299 = vmatmul.f32.vlgmr.msra.gmra.mxu3 %v192_v56  ;;  %339 = vmatmul.f32.vlgmr.msrb.gmra.mxu1 %v192_v56  ;;  %v447_v56 = vld [vmem:[%s1053_s5 + $0x80] sm:$0xff] }
  0xd6   :  { %500 = vmatpush.msrb.mxu3 %v449_v48  ;;  %479 = vmatpush.msrb.mxu2 %v434_v55 }
  0xd8   :  { %501 = vmatpush.msrb.mxu3 %v448_v6  ;;  %480 = vmatpush.msrb.mxu2 %v433_v57 }
  0xda   :  { %502 = vmatpush.msrb.mxu3 %v447_v56 }
 0x151   :  { %v320_v59 = vpop.f32.mrf.mxu0 }
 0x152   :  { %v321_v60 = vadd.f32 %v320_v59, %v260_v0  ;;  %v340_v63 = vpop.f32.mrf.mxu1 }
 0x154   :  { %v925_v5 = vadd.f32 %v340_v63, %v321_v60  ;;  %v432_v60 = vld [vmem:[%s1053_s5 + $0x8] sm:$0xff]  ;;  %v431_v63 = vld [vmem:[%s1053_s5] sm:$0xff] }
 0x155   :  { %481 = vmatpush.msrb.mxu2 %v432_v60 }
 0x156   :  { %v934_v10 = vmul.f32 0.70710677, %v925_v5 }
 0x157   :  { %v280_v11 = vpop.f32.mrf.mxu2  ;;  %482 = vmatpush.msrb.mxu2 %v431_v63 }
 0x158   :  { %v281_v12 = vadd.f32 %v280_v11, %v259_v2  ;;  %v387_v15 = vmul.f32 %v934_v10, %v934_v10  ;;  %v300_v16 = vpop.f32.mrf.mxu3 }
 0x15a   :  { %v950_v21 = vmin.f32 %v387_v15, 16.0  ;;  %v952_v22 = vadd.f32 %v300_v16, %v281_v12 }
 0x15c   :  { %v389_v25 = vmul.f32 2.1237322e-06, %v950_v21  ;;  %v400_v26 = vmul.f32 3.8918573e-05, %v950_v21  ;;  %v963_v27 = vmul.f32 0.70710677, %v952_v22 }
 0x15e   :  { %v390_v30 = vadd.f32 0.00028619796, %v389_v25  ;;  %v401_v31 = vadd.f32 0.001143296, %v400_v26  ;;  %v347_v32 = vmul.f32 %v963_v27, %v963_v27 }
 0x160   :  { %v391_v35 = vmul.f32 %v390_v30, %v950_v21  ;;  %v402_v36 = vmul.f32 %v401_v31, %v950_v21  ;;  %v981_v37 = vmin.f32 %v347_v32, 16.0 }
 0x162   :  { %v392_v40 = vadd.f32 0.0036580483, %v391_v35  ;;  %v403_v18 = vadd.f32 0.014752088, %v402_v36  ;;  %v349_v41 = vmul.f32 2.1237322e-06, %v981_v37 }
 0x163   :  { %v360_v19 = vmul.f32 3.8918573e-05, %v981_v37 }
 0x164   :  { %v404_v44 = vmul.f32 %v403_v18, %v950_v21  ;;  %v350_v45 = vadd.f32 0.00028619796, %v349_v41  ;;  %v393_v50 = vmul.f32 %v392_v40, %v950_v21 }
 0x165   :  { %v361_v46 = vadd.f32 0.001143296, %v360_v19 }
 0x166   :  { %v405_v49 = vadd.f32 0.112945676, %v404_v44  ;;  %v351_v51 = vmul.f32 %v350_v45, %v981_v37  ;;  %v394_v58 = vadd.f32 0.05243302, %v393_v50  ;;  %v344_v44 = vmul.f32 0.5, %v925_v5 }
 0x167   :  { %v362_v52 = vmul.f32 %v361_v46, %v981_v37  ;;  %v516_v5 = vld [vmem:[%s1054_s6] ss:$0 sm:$0xff] }
 0x168   :  { %v406_v54 = vmul.f32 %v405_v49, %v950_v21  ;;  %v352_v1 = vadd.f32 0.0036580483, %v351_v51  ;;  %v395_v4 = vmul.f32 %v394_v58, %v950_v21  ;;  %v343_v51 = vmul.f32 0.5, %v952_v22 }
 0x169   :  { %v363_v7 = vadd.f32 0.014752088, %v362_v52 }
 0x16a   :  { %v407_v0 = vadd.f32 0.4994258, %v406_v54  ;;  %v353_v3 = vmul.f32 %v352_v1, %v981_v37  ;;  %v396_v12 = vadd.f32 0.18741608, %v395_v4 }
 0x16b   :  { %v364_v59 = vmul.f32 %v363_v7, %v981_v37 }
 0x16c   :  { %v408_v61 = vmul.f32 %v407_v0, %v950_v21  ;;  %v354_v11 = vadd.f32 0.05243302, %v353_v3  ;;  %v397_v17 = vmul.f32 %v396_v12, %v950_v21 }
 0x16d   :  { %v365_v62 = vadd.f32 0.112945676, %v364_v59 }
 0x16e   :  { %v409_v2 = vadd.f32 1.0, %v408_v61  ;;  %v355_v16 = vmul.f32 %v354_v11, %v981_v37  ;;  %v398_v26 = vadd.f32 1.1283791, %v397_v17 }
 0x16f   :  { %v366_v8 = vmul.f32 %v365_v62, %v981_v37 }
 0x170   :  { %521 = vrcp.f32 %v409_v2  ;;  %v421_v24 = vand.u32 2147483648, %v409_v2  ;;  %v356_v25 = vadd.f32 0.18741608, %v355_v16  ;;  %v419_v29 = vand.u32 2147483647, %v409_v2 }
 0x171   :  { %v367_v9 = vadd.f32 0.4994258, %v366_v8  ;;  %vm415_vm9 = vweird.f32 %v409_v2  ;;  %v399_v35 = vmul.f32 %v398_v26, %v934_v10 }
 0x172   :  { %v422_v32 = vor.u32 1.1754944e-38, %v421_v24  ;;  %v357_v33 = vmul.f32 %v356_v25, %v981_v37  ;;  %vm420_vm11 = vcmp.eq.f32.partialorder %v419_v29, 8.507059e+37 }
 0x173   :  { %v368_v13 = vmul.f32 %v367_v9, %v981_v37 }
 0x174   :  { %v358_v18 = vadd.f32 1.1283791, %v357_v33 }
 0x175   :  { %v369_v14 = vadd.f32 1.0, %v368_v13 }
 0x176   :  { %v522_v15 = vpop.eup %521  ;;  %v359_v10 = vmul.f32 %v358_v18, %v963_v27 }
 0x177   :  { %v411_v20 = vmul.f32 %v522_v15, %v409_v2  ;;  %523 = vrcp.f32 %v369_v14  ;;  %vm416_vm8 = vweird.f32 %v522_v15  ;;  %v381_v40 = vand.u32 2147483648, %v369_v14 }
 0x178   :  { %vm417_vm10 = vmor %vm415_vm9, %vm416_vm8  ;;  %v379_v19 = vand.u32 2147483647, %v369_v14  ;;  %vm375_vm13 = vweird.f32 %v369_v14 }
 0x179   :  { %v412_v23 = vsub.f32 1.0, %v411_v20  ;;  %v382_v37 = vor.u32 1.1754944e-38, %v381_v40 }
 0x17a   :  { %vm380_vm15 = vcmp.eq.f32.partialorder %v379_v19, 8.507059e+37 }
 0x17b   :  { %v413_v28 = vmul.f32 %v522_v15, %v412_v23 }
 0x17d   :  { %v524_v30 = vpop.eup %523  ;;  %v414_v31 = vadd.f32 %v522_v15, %v413_v28 }
 0x17e   :  { %v371_v34 = vmul.f32 %v524_v30, %v369_v14  ;;  %vm376_vm12 = vweird.f32 %v524_v30 }
 0x17f   :  { %v418_v21 = vsel %vm417_vm10, %v522_v15, %v414_v31  ;;  %vm377_vm14 = vmor %vm375_vm13, %vm376_vm12 }
 0x180   :  { %v423_v36 = vsel %vm420_vm11, %v422_v32, %v418_v21  ;;  %v372_v38 = vsub.f32 1.0, %v371_v34 }
 0x181   :  { %v424_v39 = vmul.f32 %v423_v36, %v399_v35 }
 0x182   :  { %v373_v41 = vmul.f32 %v524_v30, %v372_v38 }
 0x183   :  { %v515_v42 = vclamps-f32 %v424_v39, 1.0 }
 0x184   :  { %v374_v43 = vadd.f32 %v524_v30, %v373_v41 }
 0x185   :  { %v428_v45 = vadd.f32 1.0, %v515_v42 }
 0x186   :  { %v378_v46 = vsel %vm377_vm14, %v524_v30, %v374_v43 }
 0x187   :  { %v383_v47 = vsel %vm380_vm15, %v382_v37, %v378_v46  ;;  %v430_v48 = vmul.f32 %v428_v45, %v344_v44 }
 0x188   :  { %v384_v49 = vmul.f32 %v383_v47, %v359_v10 }
 0x189   :  { %503 = vmatmul.f32.vlgmr.msrb.gmra.mxu3 %v430_v48 }
 0x18a   :  { %v514_v50 = vclamps-f32 %v384_v49, 1.0 }
 0x18c   :  { %v427_v52 = vadd.f32 1.0, %v514_v50 }
 0x18e   :  { %v429_v53 = vmul.f32 %v427_v52, %v343_v51 }
 0x190   :  { %483 = vmatmul.f32.vlgmr.msrb.gmra.mxu2 %v429_v53 }
 0x20c   :  { %v504_v55 = vpop.f32.mrf.mxu3 }
 0x213   :  { %v484_v6 = vpop.f32.mrf.mxu2 }
 0x214   :  { %v485_v54 = vadd.f32 %v516_v5, %v484_v6 }
 0x216   :  { %v505_v27 = vadd.f32 %v504_v55, %v485_v54 }
 0x218   :  { %507 = vst [vmem:[%s1055_s7] sm:$0xff] %v505_v27 }

</bundles_post_ra>
